<compile_context>
chip_gen: v7x
topology: tpu7x:2x2x1
jax: 0.10.0
libtpu: 0.0.40
codegen_flags: <defaults>
</compile_context>

<pallas_src>
import functools

import jax
import jax.numpy as jnp
from jax import lax
from jax.experimental import pallas as pl
from jax.experimental.pallas import tpu as pltpu


def _round_up(x, m):
    return ((x + m - 1) // m) * m


def _hash_u32(h):
    """Portable per-element integer mix (lowesque murmur/pcg finalizer)."""
    h = h ^ (h >> 16)
    h = h * jnp.uint32(0x7FEB352D)
    h = h ^ (h >> 15)
    h = h * jnp.uint32(0x846CA68B)
    h = h ^ (h >> 16)
    return h


def _feedback_kernel(mask_index, dropout_p, training,
                     seed_ref,                      # scalar prefetch (SMEM)
                     x_ref, yz_ref, w_ref, b_ref,   # inputs
                     xnew_ref, mask_ref):           # outputs
    rows, feat = x_ref.shape                        # feat = lane-padded mod1

    # One fused MXU pass: [y|z] @ blockdiag(W1, W2) + [b1|b2]  -> [oy|oz].
    o = jnp.dot(yz_ref[...], w_ref[...],
                preferred_element_type=jnp.float32) + b_ref[...]
    o = jax.nn.sigmoid(o)                           # one EUP pass over wide tile
    m1 = o[:, :feat]
    m2 = o[:, feat:]

    # Combine masks (mask_index is Python-static -> trace-time branch).
    if mask_index in (1, 4):
        mask = (m1 + m2) * 0.5
    elif mask_index == 2:
        mask = jnp.maximum(m1, m2)
    elif mask_index == 3:
        mask = jnp.minimum(m1, m2)
    elif mask_index == 5:
        mask = jnp.where(jnp.abs(m1 - 0.5) > jnp.abs(m2 - 0.5), m1, m2)
    else:
        raise ValueError("Invalid mask_index. Must be between 1 and 5.")

    # F.dropout(mask, p) — training=True matches the reference default.
    if training and dropout_p > 0.0:
        row0 = pl.program_id(0) * rows
        r = lax.broadcasted_iota(jnp.int32, (rows, feat), 0) + row0
        c = lax.broadcasted_iota(jnp.int32, (rows, feat), 1)
        gidx = (r * jnp.int32(feat) + c).astype(jnp.uint32)
        seed_u = seed_ref[0].astype(jnp.uint32) * jnp.uint32(2654435761)
        bits = _hash_u32(gidx + seed_u)
        # P(drop) = thresh / 2^32 ~= dropout_p (error <= 2^-32).
        thresh = jnp.uint32(min(int(dropout_p * (2 ** 32)), 2 ** 32 - 1))
        inv_keep = jnp.float32(1.0 / (1.0 - dropout_p))
        mask = jnp.where(bits >= thresh, mask * inv_keep, jnp.float32(0.0))

    # Reference forward reduces to x * mask in static-mask mode; mask returned
    # post-dropout (matches mmlatch).
    xnew_ref[...] = (x_ref[...] * mask).astype(xnew_ref.dtype)
    mask_ref[...] = mask.astype(mask_ref.dtype)


def feedback_unit_static_mask(x2d, y2d, z2d, w1, b1, w2, b2, seed, *,
                              mask_index=1, dropout_p=0.2, training=True,
                              block_rows=512):
    """x2d: (M, mod1), y2d/z2d: (M, H), w1/w2: (H, mod1). Returns (x_new, mask)."""
    assert 0.0 <= dropout_p < 1.0, "dropout_p must be in [0, 1)"
    M, mod1 = x2d.shape
    _, H = y2d.shape
    dtype = x2d.dtype

    # ---- lane-dense feature padding (mod1 -> multiple of 128) ----------------
    P = _round_up(mod1, 128)
    if P != mod1:
        x2d = jnp.pad(x2d, ((0, 0), (0, P - mod1)))
        w1 = jnp.pad(w1, ((0, 0), (0, P - mod1)))
        w2 = jnp.pad(w2, ((0, 0), (0, P - mod1)))
        b1 = jnp.pad(b1, ((0, P - mod1),))
        b2 = jnp.pad(b2, ((0, P - mod1),))

    # ---- fuse the two Linears: [y|z] and block-diagonal weight ---------------
    yz = jnp.concatenate([y2d, z2d], axis=-1)                     # (M, 2H)
    w_bd = (jnp.zeros((2 * H, 2 * P), w1.dtype)
            .at[:H, :P].set(w1)
            .at[H:, P:].set(w2))                                  # (2H, 2P)
    b_cat = jnp.concatenate([b1, b2]).reshape(1, 2 * P)           # (1, 2P)

    # ---- big row tiles; pad M to a tile multiple (tail handling) -------------
    bm = min(block_rows, _round_up(M, 8))
    bm = _round_up(bm, 8)
    Mp = _round_up(M, bm)
    if Mp != M:
        x2d = jnp.pad(x2d, ((0, Mp - M), (0, 0)))
        yz = jnp.pad(yz, ((0, Mp - M), (0, 0)))
    grid = (Mp // bm,)

    # VMEM budget (double-buffered ins/outs + resident weights); keep well
    # under v7x's 32 MiB scoped default / 64 MiB physical.
    vmem_est = (2 * (bm * P + bm * 2 * H) * 4          # x, yz input buffers
                + 2 * 2 * bm * P * 4                   # two outputs
                + (2 * H * 2 * P + 2 * P) * 4)         # weights + bias
    assert vmem_est < 16 * 1024 * 1024, "shrink block_rows for this problem size"

    kernel = functools.partial(_feedback_kernel, mask_index, dropout_p, training)

    # index_maps receive the scalar-prefetch ref (seed) as a trailing arg.
    row_x = pl.BlockSpec((bm, P), lambda i, seed: (i, 0))
    row_yz = pl.BlockSpec((bm, 2 * H), lambda i, seed: (i, 0))
    full_w = pl.BlockSpec((2 * H, 2 * P), lambda i, seed: (0, 0))
    full_b = pl.BlockSpec((1, 2 * P), lambda i, seed: (0, 0))

    grid_spec = pltpu.PrefetchScalarGridSpec(
        num_scalar_prefetch=1,
        grid=grid,
        in_specs=[row_x, row_yz, full_w, full_b],
        out_specs=[row_x, row_x],
    )

    out_shapes = (jax.ShapeDtypeStruct((Mp, P), dtype),
                  jax.ShapeDtypeStruct((Mp, P), dtype))   # mask in x's dtype

    x_new_p, mask_p = pl.pallas_call(
        kernel,
        grid_spec=grid_spec,
        out_shape=out_shapes,
        compiler_params=pltpu.CompilerParams(
            dimension_semantics=("parallel",)),            # v7x: 2 TCs split rows
    )(seed, x2d, yz, w_bd, b_cat)

    # strip row/lane padding
    return x_new_p[:M, :mod1], mask_p[:M, :mod1]


if __name__ == "__main__":
    key = jax.random.PRNGKey(0)
    B, T, H, MOD1 = 2, 8, 32, 16     # batch, seq, hidden_dim, mod1_sz

    kx, ky, kz, kw1, kb1, kw2, kb2 = jax.random.split(key, 7)
    x = jax.random.normal(kx, (B, T, MOD1), dtype=jnp.float32)
    y = jax.random.normal(ky, (B, T, H), dtype=jnp.float32)
    z = jax.random.normal(kz, (B, T, H), dtype=jnp.float32)

    # Deterministic nn.Linear-style init: U(-1/sqrt(in), 1/sqrt(in)).
    bound = 1.0 / (H ** 0.5)
    w1 = jax.random.uniform(kw1, (H, MOD1), minval=-bound, maxval=bound,
                            dtype=jnp.float32)
    b1 = jax.random.uniform(kb1, (MOD1,), minval=-bound, maxval=bound,
                            dtype=jnp.float32)
    w2 = jax.random.uniform(kw2, (H, MOD1), minval=-bound, maxval=bound,
                            dtype=jnp.float32)
    b2 = jax.random.uniform(kb2, (MOD1,), minval=-bound, maxval=bound,
                            dtype=jnp.float32)

    seed = jnp.array([42], dtype=jnp.int32)   # dropout PRNG seed

    # Flatten (B, T, .) -> (B*T, .) for the kernel, restore afterwards.
    x2d = x.reshape(B * T, MOD1)
    y2d = y.reshape(B * T, H)
    z2d = z.reshape(B * T, H)

    x_new2d, mask2d = feedback_unit_static_mask(
        x2d, y2d, z2d, w1, b1, w2, b2, seed,
        mask_index=1, dropout_p=0.2, training=True)

    x_new = x_new2d.reshape(B, T, MOD1)
    mask = mask2d.reshape(B, T, MOD1)
    jax.block_until_ready((x_new, mask))

    assert x_new.shape == (B, T, MOD1) and mask.shape == (B, T, MOD1)
    assert bool(jnp.all(jnp.isfinite(x_new))) and bool(jnp.all(jnp.isfinite(mask)))
    print("KERNEL_OK")
</pallas_src>

<mosaic_0001>
module attributes {stable_mosaic.version = 11 : i64} {
  func.func @_feedback_kernel(%arg0: i32, %arg1: memref<1xi32, #tpu.memory_space<smem>>, %arg2: memref<16x128xf32, #tpu.memory_space<vmem>>, %arg3: memref<16x64xf32, #tpu.memory_space<vmem>>, %arg4: memref<64x256xf32, #tpu.memory_space<vmem>>, %arg5: memref<1x256xf32, #tpu.memory_space<vmem>>, %arg6: memref<16x128xf32, #tpu.memory_space<vmem>>, %arg7: memref<16x128xf32, #tpu.memory_space<vmem>>) attributes {dimension_semantics = [#tpu.dimension_semantics<parallel>], iteration_bounds = array<i64: 1>, scalar_prefetch = 1 : i64, scratch_operands = 0 : i64, tpu.core_type = #tpu.core_type<tc>, window_params = [{transform_indices = @transform_0, window_bounds = array<i64: 16, 128>}, {transform_indices = @transform_1, window_bounds = array<i64: 16, 64>}, {pipeline_mode = #tpu.pipeline_mode<synchronous>, transform_indices = @transform_2, window_bounds = array<i64: 64, 256>}, {pipeline_mode = #tpu.pipeline_mode<synchronous>, transform_indices = @transform_3, window_bounds = array<i64: 1, 256>}, {transform_indices = @transform_4, window_bounds = array<i64: 16, 128>}, {transform_indices = @transform_5, window_bounds = array<i64: 16, 128>}]} {
    %c0 = arith.constant 0 : index
    %c0_0 = arith.constant 0 : index
    %0 = vector.load %arg3[%c0, %c0_0] : memref<16x64xf32, #tpu.memory_space<vmem>>, vector<16x64xf32>
    %c0_1 = arith.constant 0 : index
    %c0_2 = arith.constant 0 : index
    %1 = vector.load %arg4[%c0_1, %c0_2] : memref<64x256xf32, #tpu.memory_space<vmem>>, vector<64x256xf32>
    %cst = arith.constant dense<0.000000e+00> : vector<16x256xf32>
    %2 = tpu.matmul %0, %1, %cst {dimension_numbers = #tpu.dot_dimension_numbers<[1], [0], [0], [1], [0, 0, 1, 1], [], []>} : vector<16x64xf32>, vector<64x256xf32>, vector<16x256xf32> -> vector<16x256xf32>
    %c0_3 = arith.constant 0 : index
    %c0_4 = arith.constant 0 : index
    %3 = vector.load %arg5[%c0_3, %c0_4] : memref<1x256xf32, #tpu.memory_space<vmem>>, vector<1x256xf32>
    %4 = vector.broadcast %3 : vector<1x256xf32> to vector<16x256xf32>
    %5 = arith.addf %2, %4 : vector<16x256xf32>
    %6 = arith.negf %5 : vector<16x256xf32>
    %7 = math.exp %6 : vector<16x256xf32>
    %cst_5 = arith.constant 1.000000e+00 : f32
    %8 = vector.broadcast %cst_5 : f32 to vector<16x256xf32>
    %9 = arith.addf %8, %7 : vector<16x256xf32>
    %10 = arith.divf %8, %9 : vector<16x256xf32>
    %11 = vector.extract_strided_slice %10 {offsets = [0, 0], sizes = [16, 128], strides = [1, 1]} : vector<16x256xf32> to vector<16x128xf32>
    %12 = vector.extract_strided_slice %10 {offsets = [0, 128], sizes = [16, 128], strides = [1, 1]} : vector<16x256xf32> to vector<16x128xf32>
    %13 = arith.addf %11, %12 : vector<16x128xf32>
    %cst_6 = arith.constant 5.000000e-01 : f32
    %14 = vector.broadcast %cst_6 : f32 to vector<16x128xf32>
    %15 = arith.mulf %13, %14 : vector<16x128xf32>
    %c16_i32 = arith.constant 16 : i32
    %16 = arith.muli %arg0, %c16_i32 : i32
    %17 = tpu.iota {dimensions = array<i32: 0>} : vector<16x128xi32>
    %18 = vector.broadcast %16 : i32 to vector<16x128xi32>
    %19 = arith.addi %17, %18 : vector<16x128xi32>
    %20 = tpu.iota {dimensions = array<i32: 1>} : vector<16x128xi32>
    %c128_i32 = arith.constant 128 : i32
    %21 = vector.broadcast %c128_i32 : i32 to vector<16x128xi32>
    %22 = arith.muli %19, %21 : vector<16x128xi32>
    %23 = arith.addi %22, %20 : vector<16x128xi32>
    %c0_7 = arith.constant 0 : index
    %24 = memref.load %arg1[%c0_7] : memref<1xi32, #tpu.memory_space<smem>>
    %c-1640531535_i32 = arith.constant -1640531535 : i32
    %25 = arith.muli %24, %c-1640531535_i32 : i32
    %26 = vector.broadcast %25 : i32 to vector<16x128xi32>
    %27 = arith.addi %23, %26 : vector<16x128xi32>
    %c16_i32_8 = arith.constant 16 : i32
    %28 = vector.broadcast %c16_i32_8 : i32 to vector<16x128xi32>
    %29 = arith.shrui %27, %28 : vector<16x128xi32>
    %30 = arith.xori %27, %29 : vector<16x128xi32>
    %c2146121005_i32 = arith.constant 2146121005 : i32
    %31 = vector.broadcast %c2146121005_i32 : i32 to vector<16x128xi32>
    %32 = arith.muli %30, %31 : vector<16x128xi32>
    %c15_i32 = arith.constant 15 : i32
    %33 = vector.broadcast %c15_i32 : i32 to vector<16x128xi32>
    %34 = arith.shrui %32, %33 : vector<16x128xi32>
    %35 = arith.xori %32, %34 : vector<16x128xi32>
    %c-2073254261_i32 = arith.constant -2073254261 : i32
    %36 = vector.broadcast %c-2073254261_i32 : i32 to vector<16x128xi32>
    %37 = arith.muli %35, %36 : vector<16x128xi32>
    %c16_i32_9 = arith.constant 16 : i32
    %38 = vector.broadcast %c16_i32_9 : i32 to vector<16x128xi32>
    %39 = arith.shrui %37, %38 : vector<16x128xi32>
    %40 = arith.xori %37, %39 : vector<16x128xi32>
    %c858993459_i32 = arith.constant 858993459 : i32
    %41 = vector.broadcast %c858993459_i32 : i32 to vector<16x128xi32>
    %42 = arith.cmpi uge, %40, %41 : vector<16x128xi32>
    %cst_10 = arith.constant 1.250000e+00 : f32
    %43 = vector.broadcast %cst_10 : f32 to vector<16x128xf32>
    %44 = arith.mulf %15, %43 : vector<16x128xf32>
    %cst_11 = arith.constant 0.000000e+00 : f32
    %45 = vector.broadcast %cst_11 : f32 to vector<16x128xf32>
    %46 = arith.select %42, %44, %45 : vector<16x128xi1>, vector<16x128xf32>
    %c0_12 = arith.constant 0 : index
    %c0_13 = arith.constant 0 : index
    %47 = vector.load %arg2[%c0_12, %c0_13] : memref<16x128xf32, #tpu.memory_space<vmem>>, vector<16x128xf32>
    %48 = arith.mulf %47, %46 : vector<16x128xf32>
    %c0_14 = arith.constant 0 : index
    %c0_15 = arith.constant 0 : index
    %49 = vector.load %arg6[%c0_14, %c0_15] : memref<16x128xf32, #tpu.memory_space<vmem>>, vector<16x128xf32>
    tpu.vector_store %arg6[%c0_14, %c0_15], %48 {strides = array<i32>} : memref<16x128xf32, #tpu.memory_space<vmem>>, vector<16x128xf32>,
    %c0_16 = arith.constant 0 : index
    %c0_17 = arith.constant 0 : index
    %50 = vector.load %arg7[%c0_16, %c0_17] : memref<16x128xf32, #tpu.memory_space<vmem>>, vector<16x128xf32>
    tpu.vector_store %arg7[%c0_16, %c0_17], %46 {strides = array<i32>} : memref<16x128xf32, #tpu.memory_space<vmem>>, vector<16x128xf32>,
    return
  }
  func.func @transform_0(%arg0: i32, %arg1: memref<1xi32, #tpu.memory_space<smem>>) -> (i32, i32) {
    %c0_i32 = arith.constant 0 : i32
    %c0_i32_0 = arith.constant 0 : i32
    return %arg0, %c0_i32 : i32, i32
  }
  func.func @transform_1(%arg0: i32, %arg1: memref<1xi32, #tpu.memory_space<smem>>) -> (i32, i32) {
    %c0_i32 = arith.constant 0 : i32
    %c0_i32_0 = arith.constant 0 : i32
    return %arg0, %c0_i32 : i32, i32
  }
  func.func @transform_2(%arg0: i32, %arg1: memref<1xi32, #tpu.memory_space<smem>>) -> (i32, i32) {
    %c0_i32 = arith.constant 0 : i32
    %c0_i32_0 = arith.constant 0 : i32
    %c0_i32_1 = arith.constant 0 : i32
    return %c0_i32, %c0_i32_0 : i32, i32
  }
  func.func @transform_3(%arg0: i32, %arg1: memref<1xi32, #tpu.memory_space<smem>>) -> (i32, i32) {
    %c0_i32 = arith.constant 0 : i32
    %c0_i32_0 = arith.constant 0 : i32
    %c0_i32_1 = arith.constant 0 : i32
    return %c0_i32, %c0_i32_0 : i32, i32
  }
  func.func @transform_4(%arg0: i32, %arg1: memref<1xi32, #tpu.memory_space<smem>>) -> (i32, i32) {
    %c0_i32 = arith.constant 0 : i32
    %c0_i32_0 = arith.constant 0 : i32
    return %arg0, %c0_i32 : i32, i32
  }
  func.func @transform_5(%arg0: i32, %arg1: memref<1xi32, #tpu.memory_space<smem>>) -> (i32, i32) {
    %c0_i32 = arith.constant 0 : i32
    %c0_i32_0 = arith.constant 0 : i32
    return %arg0, %c0_i32 : i32, i32
  }
}

</mosaic_0001>

<bundles_post_ra>
// kernel: tpu_custom_call.1
= control target key start
LH: loop header
LB: loop body
LE: loop exit
PB: predicated region body
PF: predicated region fallthrough
CT: control target
= control target key end

     0   :  { %13 = vsyncpa [#allocation5], 0  ;;  %s599_s0 = inlined_call_operand.<no memory space> [shape: s32[1], index: 0, kind: input, shape index: {}]   ;;  %s600_s1 = inlined_call_operand.hbm [shape: f32[16,128], index: 1, kind: input, shape index: {}]   ;;  %s601_s2 = inlined_call_operand.hbm [shape: f32[16,64], index: 2, kind: input, shape index: {}]   ;;  %s602_s3 = inlined_call_operand.hbm [shape: f32[64,256], index: 3, kind: input, shape index: {}]   ;;  %s603_s4 = inlined_call_operand.vmem [shape: f32[1,256], index: 4, kind: input, shape index: {}]   ;;  %s604_s5 = inlined_call_operand.hbm [shape: f32[16,128], index: 5, kind: output, shape index: {0}]   ;;  %s605_s6 = inlined_call_operand.hbm [shape: f32[16,128], index: 6, kind: output, shape index: {1}]  }
   0x1   :  { %14 = vsyncpa [#allocation8], 0 }
   0x2   :  { %15 = vsyncpa [#allocation6], 0 }
   0x3   :  { %16 = vsyncpa [#allocation12], 0  ;;  %s462_s21 = smov [#allocation7]   ;;  %s463_s23 = smov [#allocation4]  }
   0x4   :  { %s34_s22 = sshll.u32 %s462_s21, 4  ;;  %s22_s24 = sshll.u32 %s463_s23, 4  ;;  %s35_s22 = int_to_ptr.vmem [resolvable:$true] %s34_s22  ;;  %s507_s24 = int_to_ptr.vmem [resolvable:$true] %s22_s24 }
   0x5   :  { %s344_s27 = scalar_lea.hbm %s601_s2, 256 }
   0x6   :  { %p345_p0 = scmp.ne.s32.totalorder %s601_s2, %s344_s27  ;;  %p348_p1 = scmp.lt.u32.totalorder %s344_s27, %s601_s2 }
   0x8   :  { %p350_p2 = pnand %p348_p1, %p345_p0 }
   0xa   :  { %353 = shalt.err (!%p350_p2)
}
   0xb   :  { %s354_s8 = scalar_lea.vmem %s35_s22, 256  ;;  %p359_p4 = scmp.lt.s32.totalorder %s35_s22, %s35_s22 }
   0xc   :  { %p355_p3 = scmp.ne.s32.totalorder %s35_s22, %s354_s8  ;;  %p360_p5 = scmp.lt.s32.totalorder %s354_s8, %s354_s8 }
   0xe   :  { %p361_p6 = por %p360_p5, %p359_p4 }
  0x10   :  { %p362_p7 = pnand %p361_p6, %p355_p3 }
  0x12   :  { %365 = shalt.err (!%p362_p7)
}
  0x13   :  { %s464_s9 = smov 128   ;;  %s465_s10 = smov 8  }
  0x14   :  { %40 = dma.hbm_to_vmem [thread:$0]  %s601_s2, 256, %s35_s22, [#allocation8], %s464_s9, %s464_s9, %s465_s10  }
  0x15   :  { %s366_s15 = scalar_lea.hbm %s600_s1, 256 }
  0x16   :  { %p367_p8 = scmp.ne.s32.totalorder %s600_s1, %s366_s15  ;;  %p370_p9 = scmp.lt.u32.totalorder %s366_s15, %s600_s1 }
  0x18   :  { %p372_p10 = pnand %p370_p9, %p367_p8 }
  0x1a   :  { %375 = shalt.err (!%p372_p10)
}
  0x1b   :  { %s376_s20 = scalar_lea.vmem %s507_s24, 256  ;;  %p381_p12 = scmp.lt.s32.totalorder %s507_s24, %s507_s24 }
  0x1c   :  { %p377_p11 = scmp.ne.s32.totalorder %s507_s24, %s376_s20  ;;  %p382_p13 = scmp.lt.s32.totalorder %s376_s20, %s376_s20 }
  0x1e   :  { %p383_p0 = por %p382_p13, %p381_p12 }
  0x20   :  { %p384_p1 = pnand %p383_p0, %p377_p11 }
  0x22   :  { %387 = shalt.err (!%p384_p1)
}
  0x23   :  { %28 = dma.hbm_to_vmem [thread:$0]  %s600_s1, 256, %s507_s24, [#allocation5], %s464_s9, %s464_s9, %s465_s10  }
  0x24   :  { %s466_s22 = smov [#allocation9]   ;;  %s388_s27 = scalar_lea.hbm %s602_s3, 2048 }
  0x25   :  { %s46_s23 = sshll.u32 %s466_s22, 4  ;;  %p389_p2 = scmp.ne.s32.totalorder %s602_s3, %s388_s27  ;;  %s47_s23 = int_to_ptr.vmem [resolvable:$true] %s46_s23 }
  0x26   :  { %p392_p3 = scmp.lt.u32.totalorder %s388_s27, %s602_s3 }
  0x28   :  { %p394_p4 = pnand %p392_p3, %p389_p2 }
  0x2a   :  { %397 = shalt.err (!%p394_p4)
}
  0x2b   :  { %s398_s8 = scalar_lea.vmem %s47_s23, 2048  ;;  %p403_p6 = scmp.lt.s32.totalorder %s47_s23, %s47_s23 }
  0x2c   :  { %p399_p5 = scmp.ne.s32.totalorder %s47_s23, %s398_s8  ;;  %p404_p7 = scmp.lt.s32.totalorder %s398_s8, %s398_s8 }
  0x2e   :  { %p405_p8 = por %p404_p7, %p403_p6 }
  0x30   :  { %p406_p9 = pnand %p405_p8, %p399_p5 }
  0x32   :  { %409 = shalt.err (!%p406_p9)
}
  0x33   :  { %s467_s1 = smov 256   ;;  %s468_s24 = smov 16  }
  0x34   :  { %52 = dma.hbm_to_vmem [thread:$0]  %s602_s3, 2048, %s47_s23, [#allocation8], %s467_s1, %s467_s1, %s468_s24  }
  0x35   :  { %454 = dma.done.wait [#allocation5], 256  }
  0x36   :  { %455 = vsyncadd [#allocation5], 4294967040 }
  0x37   :  { %456 = dma.done.wait [#allocation8], 2304  }
  0x38   :  { %457 = vsyncadd [#allocation8], 4294964992  ;;  %v469_v0 = vmov 0.0   ;;  %v67_v1 = vld [vmem:[#allocation9 + $0x8] sm:$0xff]  ;;  %v69_v2 = vld [vmem:[#allocation9 + $0x18] sm:$0xff]  ;;  %vm94_vm0 = vcmask 523264   ;;  %v84_v27 = vlaneseq }
  0x39   :  { %165 = vmatprep.mubr.f32.mxu0 %v469_v0  ;;  %171 = vmatprep.mubr.f32.mxu1 %v469_v0  ;;  %v66_v3 = vld [vmem:[#allocation9] sm:$0xff]  ;;  %v294_v4 = vpack.c.bf16 %v69_v2, %v67_v1  ;;  %v68_v5 = vld [vmem:[#allocation9 + $0x10] sm:$0xff]  ;;  %v71_v6 = vld [vmem:[#allocation9 + $0x28] sm:$0xff]  ;;  %s220_s14 = smul.u32 2654435761, %s599_s0  ;;  %s470_s0 = smov [#allocation11]  }
  0x3a   :  { %v73_v7 = vld [vmem:[#allocation9 + $0x38] sm:$0xff]  ;;  %v296_v8 = vpack.c.bf16 %v68_v5, %v66_v3  ;;  %v70_v10 = vld [vmem:[#allocation9 + $0x20] sm:$0xff]  ;;  %v72_v11 = vld [vmem:[#allocation9 + $0x30] sm:$0xff]  ;;  %v85_v28 = vshrl.u32 %v84_v27, 7  ;;  %v214_v30 = vand.u32 127, %v84_v27  ;;  %s471_s17 = smov [#allocation10]  }
  0x3b   :  { %v298_v9 = vpack.c.bf16 %v73_v7, %v71_v6  ;;  %v75_v12 = vld [vmem:[#allocation9 + $0x48] sm:$0xff]  ;;  %295 = vmatprep.subr.bf16.mxu0 %v294_v4  ;;  %310 = vmatprep.subr.bf16.mxu1 %v294_v4  ;;  %v77_v13 = vld [vmem:[#allocation9 + $0x58] sm:$0xff]  ;;  %v300_v14 = vpack.c.bf16 %v72_v11, %v70_v10  ;;  %v74_v16 = vld [vmem:[#allocation9 + $0x40] sm:$0xff]  ;;  %v221_v38 = vstv %s220_s14  ;;  %s259_s18 = sshll.u32 %s471_s17, 4  ;;  %s562_s18 = int_to_ptr.vmem [resolvable:$true] %s259_s18 }
  0x3c   :  { %297 = vmatpush1.bf16.msra.mxu0 %v296_v8  ;;  %314 = vmatpush1.bf16.msra.mxu1 %v296_v8  ;;  %v302_v15 = vpack.c.bf16 %v77_v13, %v75_v12  ;;  %v76_v17 = vld [vmem:[#allocation9 + $0x50] sm:$0xff]  ;;  %v79_v18 = vld [vmem:[#allocation9 + $0x68] sm:$0xff]  ;;  %v81_v19 = vld [vmem:[#allocation9 + $0x78] sm:$0xff]  ;;  %v209_v29 = vadd.s32 8, %v85_v28  ;;  %v215_v31 = vmul.u32 128, %v85_v28  ;;  %v86_v33 = vsub.s32 0, %v85_v28 }
  0x3d   :  { %299 = vmatprep.subr.bf16.mxu0 %v298_v9  ;;  %311 = vmatprep.subr.bf16.mxu1 %v298_v9  ;;  %v304_v20 = vpack.c.bf16 %v76_v17, %v74_v16  ;;  %v306_v21 = vpack.c.bf16 %v81_v19, %v79_v18  ;;  %v78_v22 = vld [vmem:[#allocation9 + $0x60] sm:$0xff]  ;;  %v80_v23 = vld [vmem:[#allocation9 + $0x70] sm:$0xff]  ;;  %v65_v26 = vld [vmem:[#allocation7 + $0x8] sm:$0xff]  ;;  %v90_v35 = vsub.s32 1, %v85_v28 }
  0x3e   :  { %v308_v24 = vpack.c.bf16 %v80_v23, %v78_v22  ;;  %v64_v25 = vld [vmem:[#allocation7] sm:$0xff]  ;;  %v216_v32 = vmul.u32 128, %v209_v29  ;;  %v82_v34 = vld [vmem:[%s603_s4] sm:$0x3]  ;;  %v217_v36 = vadd.s32 %v215_v31, %v214_v30  ;;  %s271_s4 = sshll.u32 %s470_s0, 4  ;;  %s272_s4 = int_to_ptr.vmem [resolvable:$true] %s271_s4 }
  0x3f   :  { %v87_v39 = vrot.slane %v82_v34, %v86_v33  ;;  %v91_v40 = vrot.slane %v82_v34, %v90_v35  ;;  %s410_s19 = scalar_lea.vmem %s272_s4, 256  ;;  %p415_p11 = scmp.lt.s32.totalorder %s272_s4, %s272_s4 }
  0x40   :  { %301 = vmatpush1.bf16.msra.mxu0 %v300_v14  ;;  %315 = vmatpush1.bf16.msra.mxu1 %v300_v14  ;;  %v218_v37 = vadd.s32 %v216_v32, %v214_v30  ;;  %v222_v41 = vadd.s32 %v221_v38, %v217_v36  ;;  %p411_p10 = scmp.ne.s32.totalorder %s272_s4, %s410_s19  ;;  %p416_p12 = scmp.lt.s32.totalorder %s410_s19, %s410_s19 }
  0x41   :  { %303 = vmatprep.subr.bf16.mxu0 %v302_v15  ;;  %312 = vmatprep.subr.bf16.mxu1 %v302_v15 }
  0x42   :  { %v223_v42 = vadd.s32 %v221_v38, %v218_v37  ;;  %v224_v51 = vshrl.u32 %v222_v41, 16  ;;  %p417_p13 = por %p416_p12, %p415_p11 }
  0x44   :  { %305 = vmatpush1.bf16.msra.mxu0 %v304_v20  ;;  %316 = vmatpush1.bf16.msra.mxu1 %v304_v20  ;;  %v225_v54 = vshrl.u32 %v223_v42, 16  ;;  %v226_v57 = vxor.u32 %v224_v51, %v222_v41  ;;  %p418_p0 = pnand %p417_p13, %p411_p10 }
  0x45   :  { %307 = vmatprep.subr.bf16.mxu0 %v306_v21  ;;  %313 = vmatprep.subr.bf16.mxu1 %v306_v21 }
  0x46   :  { %v227_v58 = vxor.u32 %v225_v54, %v223_v42  ;;  %v228_v59 = vmul.u32 2146121005, %v226_v57 }
  0x48   :  { %309 = vmatpush1.bf16.msra.mxu0 %v308_v24  ;;  %317 = vmatpush1.bf16.msra.mxu1 %v308_v24  ;;  %v229_v60 = vmul.u32 2146121005, %v227_v58  ;;  %v230_v61 = vshrl.u32 %v228_v59, 15  ;;  %v246_v24 = vld [vmem:[#allocation4] sm:$0xff] }
  0x4a   :  { %v231_v63 = vshrl.u32 %v229_v60, 15  ;;  %v232_v6 = vxor.u32 %v230_v61, %v228_v59 }
  0x4b   :  { %288 = vmatmul.mubr.msk.f32.vlgmr.msra.gmra.mrb[0].mxu0 %vm94_vm0, %v64_v25  ;;  %289 = vmatmul.mubr.msk.f32.vlgmr.msra.gmra.mrb[0].mxu1 %vm94_vm0, %v65_v26  ;;  %v247_v26 = vld [vmem:[#allocation4 + $0x8] sm:$0xff] }
  0x4c   :  { %v233_v8 = vxor.u32 %v231_v63, %v229_v60  ;;  %v234_v9 = vmul.u32 2221713035, %v232_v6 }
  0x4e   :  { %v235_v10 = vmul.u32 2221713035, %v233_v8  ;;  %v236_v11 = vshrl.u32 %v234_v9, 16 }
  0x50   :  { %v237_v12 = vshrl.u32 %v235_v10, 16  ;;  %v238_v16 = vxor.u32 %v236_v11, %v234_v9 }
  0x52   :  { %v239_v19 = vxor.u32 %v237_v12, %v235_v10  ;;  %vm240_vm1 = vcmp.ge.u32.totalorder %v238_v16, 858993459 }
  0x54   :  { %vm241_vm2 = vcmp.ge.u32.totalorder %v239_v19, 858993459 }
 0x11e   :  { %v167_v43 = vpop.f32.mrb[0].mxu0  ;;  %v173_v44 = vpop.f32.mrb[0].mxu1 }
 0x11f   :  { %v168_v45 = vadd.f32 %v167_v43, %v87_v39  ;;  %v174_v46 = vadd.f32 %v173_v44, %v87_v39  ;;  %v169_v47 = vpop.f32.mrb[1].mxu0  ;;  %v175_v48 = vpop.f32.mrb[1].mxu1 }
 0x120   :  { %v170_v49 = vadd.f32 %v169_v47, %v91_v40  ;;  %v176_v50 = vadd.f32 %v175_v48, %v91_v40 }
 0x121   :  { %v290_v52 = vmul.f32 -1.442695, %v168_v45  ;;  %v292_v53 = vmul.f32 -1.442695, %v174_v46 }
 0x122   :  { %v291_v55 = vmul.f32 -1.442695, %v170_v49  ;;  %v293_v56 = vmul.f32 -1.442695, %v176_v50 }
 0x123   :  { %328 = vpow2.f32 %v290_v52 }
 0x124   :  { %330 = vpow2.f32 %v292_v53 }
 0x125   :  { %332 = vpow2.f32 %v291_v55 }
 0x126   :  { %334 = vpow2.f32 %v293_v56 }
 0x12d   :  { %v329_v62 = vpop.eup %328 }
 0x12e   :  { %v331_v0 = vpop.eup %330  ;;  %v190_v1 = vadd.f32 1.0, %v329_v62 }
 0x12f   :  { %v333_v2 = vpop.eup %332  ;;  %v192_v3 = vadd.f32 1.0, %v331_v0 }
 0x130   :  { %v335_v4 = vpop.eup %334  ;;  %336 = vrcp.f32 %v190_v1  ;;  %v191_v5 = vadd.f32 1.0, %v333_v2 }
 0x131   :  { %338 = vrcp.f32 %v192_v3  ;;  %v193_v7 = vadd.f32 1.0, %v335_v4 }
 0x132   :  { %340 = vrcp.f32 %v191_v5 }
 0x133   :  { %342 = vrcp.f32 %v193_v7 }
 0x13a   :  { %v337_v13 = vpop.eup %336 }
 0x13b   :  { %v339_v14 = vpop.eup %338 }
 0x13c   :  { %v341_v15 = vpop.eup %340 }
 0x13d   :  { %v343_v17 = vpop.eup %342  ;;  %v202_v18 = vadd.f32 %v341_v15, %v337_v13 }
 0x13e   :  { %v203_v20 = vadd.f32 %v343_v17, %v339_v14 }
 0x13f   :  { %v204_v21 = vmul.f32 0.5, %v202_v18 }
 0x140   :  { %v205_v22 = vmul.f32 0.5, %v203_v20 }
 0x141   :  { %v242_v23 = vmul.f32 1.25, %v204_v21 }
 0x142   :  { %v243_v25 = vmul.f32 1.25, %v205_v22 }
 0x143   :  { %v244_v27 = vsel %vm240_vm1, %v242_v23, 0.0 }
 0x144   :  { %v245_v28 = vsel %vm241_vm2, %v243_v25, 0.0  ;;  %v248_v29 = vmul.f32 %v246_v24, %v244_v27  ;;  %252 = vst [vmem:[#allocation11] sm:$0xff] %v244_v27 }
 0x145   :  { %v249_v30 = vmul.f32 %v247_v26, %v245_v28  ;;  %253 = vst [vmem:[#allocation11 + $0x8] sm:$0xff] %v245_v28 }
 0x146   :  { %250 = vst [vmem:[#allocation10] sm:$0xff] %v248_v29 }
 0x147   :  { %421 = shalt.err (!%p418_p0)
}
 0x148   :  { %s422_s21 = scalar_lea.hbm %s605_s6, 256 }
 0x149   :  { %p423_p1 = scmp.ne.s32.totalorder %s605_s6, %s422_s21  ;;  %p426_p2 = scmp.lt.u32.totalorder %s422_s21, %s605_s6 }
 0x14b   :  { %p428_p3 = pnand %p426_p2, %p423_p1 }
 0x14d   :  { %431 = shalt.err (!%p428_p3)
}
 0x14e   :  { %277 = dma.vmem_to_hbm [thread:$0]  %s272_s4, 256, %s605_s6, [#allocation12], %s464_s9, %s464_s9, %s465_s10   ;;  %251 = vst [vmem:[#allocation10 + $0x8] sm:$0xff] %v249_v30 }
 0x14f   :  { %s432_s29 = scalar_lea.vmem %s562_s18, 256  ;;  %p437_p5 = scmp.lt.s32.totalorder %s562_s18, %s562_s18 }
 0x150   :  { %p433_p4 = scmp.ne.s32.totalorder %s562_s18, %s432_s29  ;;  %p438_p6 = scmp.lt.s32.totalorder %s432_s29, %s432_s29 }
 0x152   :  { %p439_p7 = por %p438_p6, %p437_p5 }
 0x154   :  { %p440_p8 = pnand %p439_p7, %p433_p4 }
 0x156   :  { %443 = shalt.err (!%p440_p8)
}
 0x157   :  { %s444_s8 = scalar_lea.hbm %s604_s5, 256 }
 0x158   :  { %p445_p9 = scmp.ne.s32.totalorder %s604_s5, %s444_s8  ;;  %p448_p10 = scmp.lt.u32.totalorder %s444_s8, %s604_s5 }
 0x15a   :  { %p450_p11 = pnand %p448_p10, %p445_p9 }
 0x15c   :  { %453 = shalt.err (!%p450_p11)
}
 0x15d   :  { %265 = dma.vmem_to_hbm [thread:$0]  %s562_s18, 256, %s604_s5, [#allocation6], %s464_s9, %s464_s9, %s465_s10  }
 0x15e   :  { %458 = dma.done.wait [#allocation6], 256  }
 0x15f   :  { %459 = vsyncadd [#allocation6], 4294967040 }
 0x160   :  { %460 = dma.done.wait [#allocation12], 256  }
 0x161   :  { %461 = vsyncadd [#allocation12], 4294967040 }
 0x162   :  { %284 = vsyncpa [#allocation5], 1 }
 0x163   :  { %285 = vsyncpa [#allocation8], 1 }
 0x164   :  { %286 = vsyncpa [#allocation6], 1 }
 0x165   :  { %287 = vsyncpa [#allocation12], 1 }

</bundles_post_ra>
